<compile_context>
chip_gen: v6e
topology: v6e:2x2x1
jax: 0.10.0
libtpu: 0.0.40
codegen_flags: <defaults>
</compile_context>

<pallas_src>
import functools

import jax
import jax.numpy as jnp
import numpy as np
from jax.experimental import pallas as pl
from jax.experimental.pallas import tpu as pltpu

# Memory-space handle for BlockSpecs (small compat shim across pltpu versions).
_VMEM_SPACE = pltpu.MemorySpace.VMEM if hasattr(pltpu, "MemorySpace") else pltpu.VMEM


def _activity_lstm_kernel(
    x_ref,       # (T*BP, I)   inputs, T-major rows (row = t*BP + b), zero-padded batch
    w_ih_t_ref,  # (I, 4H)
    w_hh_t_ref,  # (H, 4H)
    b_ref,       # (1, 4H)     b_ih + b_hh combined
    w1_t_ref,    # (H, 32)
    b1_ref,      # (1, 32)
    w2_t_ref,    # (32, 5)
    b2_ref,      # (1, 5)
    out_ref,     # (T*BP, 5)   softmax probabilities (T-major rows)
    *,
    T, BP,
):
    H = w_hh_t_ref.shape[0]
    G = 4 * H

    # Hoist loop-invariant weight loads out of the unrolled recurrence.
    w_hh = w_hh_t_ref[...]
    w1 = w1_t_ref[...]
    b1 = b1_ref[...]
    w2 = w2_t_ref[...]
    b2 = b2_ref[...]

    # --- Input projection for all timesteps at once (off the serial path). ---
    xp = (
        jnp.dot(x_ref[...], w_ih_t_ref[...], preferred_element_type=jnp.float32)
        + b_ref[...]
    )  # (T*BP, 4H)

    # Hoisted per-lane constants for the sigmoid-via-tanh identity:
    #   sigmoid(x) = 0.5 * tanh(0.5 * x) + 0.5     (i, f, o lane groups)
    #   tanh(x)                                     (g lane group)
    # PyTorch gate order along the 4H lanes is (i, f, g, o).
    lane = jax.lax.broadcasted_iota(jnp.int32, (BP, G), 1)
    is_g = (lane >= 2 * H) & (lane < 3 * H)
    scale = jnp.where(is_g, 1.0, 0.5).astype(jnp.float32)   # pre- & post-multiplier
    shift = jnp.where(is_g, 0.0, 0.5).astype(jnp.float32)   # post-additive

    # --- LSTM recurrence, fully unrolled over T (serial dependency chain). ---
    h = jnp.zeros((BP, H), jnp.float32)
    c = jnp.zeros((BP, H), jnp.float32)
    h_steps = []
    for t in range(T):
        gates = xp[t * BP:(t + 1) * BP, :] + jnp.dot(
            h, w_hh, preferred_element_type=jnp.float32
        )  # (BP, 4H), 8-sublane-aligned slice of xp
        # Single EUP tanh pass over the full 128-lane gate row; the VPU affine
        # turns the i/f/o lane groups into sigmoids and leaves g as tanh.
        th = jnp.tanh(gates * scale)
        act = th * scale + shift
        i_g = act[:, 0 * H:1 * H]
        f_g = act[:, 1 * H:2 * H]
        g_g = act[:, 2 * H:3 * H]
        o_g = act[:, 3 * H:4 * H]
        c = f_g * c + i_g * g_g
        h = o_g * jnp.tanh(c)
        h_steps.append(h)          # stays in vregs; no per-step VMEM store

    # Hidden-state history: one aligned concat of 8-sublane pieces, in vregs.
    hs = jnp.concatenate(h_steps, axis=0)                    # (T*BP, H)

    # --- MLP head, batched over all rows (once, off the serial path). ---
    s = jax.nn.sigmoid(hs)                                   # (T*BP, H)
    z1 = jax.nn.sigmoid(
        jnp.dot(s, w1, preferred_element_type=jnp.float32) + b1
    )                                                        # (T*BP, 32)
    z2 = jnp.dot(z1, w2, preferred_element_type=jnp.float32) + b2   # (T*BP, 5)

    # --- Legacy nn.Softmax(): softmax over dim 0 (sequence). Rows are
    # T-major, so the reduction runs across T aligned (BP, 5) groups. ---
    z2_t = [z2[t * BP:(t + 1) * BP, :] for t in range(T)]
    m = z2_t[0]
    for t in range(1, T):
        m = jnp.maximum(m, z2_t[t])
    e_t = [jnp.exp(zt - m) for zt in z2_t]
    den = e_t[0]
    for t in range(1, T):
        den = den + e_t[t]
    inv = pl.reciprocal(den, approx=True)
    inv = inv * (2.0 - den * inv)          # one Newton step: ~f32-exact, pure VPU
    out_ref[...] = jnp.concatenate([e * inv for e in e_t], axis=0)   # one store


def activity_lstm_forward(x, params):
    """x: (T, B, I) float32 -> probs: (T, B, 5) float32."""
    T, B, I = x.shape
    H = params["w_hh_t"].shape[0]

    # Pad batch to a full 8-sublane group; padded rows are independent garbage
    # lanes (LSTM / head / dim-0 softmax are all per-batch-row independent).
    BP = -(-B // 8) * 8
    if BP != B:
        x = jnp.concatenate([x, jnp.zeros((T, BP - B, I), x.dtype)], axis=1)
    x_flat = x.reshape(T * BP, I)          # T-major rows (row = t*BP + b)

    args = (
        x_flat,
        params["w_ih_t"], params["w_hh_t"], params["b"],
        params["w1_t"], params["b1"], params["w2_t"], params["b2"],
    )

    flops = int(
        2 * T * BP * I * 4 * H          # input projection
        + 2 * T * BP * H * 4 * H        # recurrent matmuls
        + 2 * T * BP * H * 32           # Linear(H, 32)
        + 2 * T * BP * 32 * 5           # Linear(32, 5)
        + 10 * T * BP * H               # gate/cell elementwise (rough)
    )
    transcendentals = int(
        T * BP * (4 * H + H)            # per-step tanh(gates) + tanh(c)
        + T * BP * (H + 32)             # head sigmoids
        + T * BP * 5                    # softmax exp
        + BP * 5                        # approx reciprocal
    )
    bytes_accessed = int(
        sum(int(np.prod(a.shape)) * a.dtype.itemsize for a in args)
        + T * BP * 5 * 4                # output slab
    )

    kernel = functools.partial(_activity_lstm_kernel, T=T, BP=BP)
    out_flat = pl.pallas_call(
        kernel,
        out_shape=jax.ShapeDtypeStruct((T * BP, 5), jnp.float32),
        in_specs=[pl.BlockSpec(memory_space=_VMEM_SPACE)] * len(args),
        out_specs=pl.BlockSpec(memory_space=_VMEM_SPACE),
        cost_estimate=pl.CostEstimate(
            flops=flops,
            transcendentals=transcendentals,
            bytes_accessed=bytes_accessed,
        ),
    )(*args)

    # Wrapper-side layout plumbing: un-flatten and strip batch padding.
    return out_flat.reshape(T, BP, 5)[:, :B, :]


def init_params(key, input_size, hidden_size):
    """Deterministic synthetic init (uniform, PyTorch-style scale)."""
    H, I = hidden_size, input_size
    ks = jax.random.split(key, 8)
    bound = 1.0 / np.sqrt(H)
    u = lambda k, shape, b: jax.random.uniform(k, shape, jnp.float32, -b, b)
    w_ih = u(ks[0], (4 * H, I), bound)           # PyTorch weight_ih_l0
    w_hh = u(ks[1], (4 * H, H), bound)           # PyTorch weight_hh_l0
    b_ih = u(ks[2], (4 * H,), bound)
    b_hh = u(ks[3], (4 * H,), bound)
    w1 = u(ks[4], (32, H), 1.0 / np.sqrt(H))     # Linear(H, 32).weight
    b1 = u(ks[5], (32,), 1.0 / np.sqrt(H))
    w2 = u(ks[6], (5, 32), 1.0 / np.sqrt(32))    # Linear(32, 5).weight
    b2 = u(ks[7], (5,), 1.0 / np.sqrt(32))
    return {
        "w_ih_t": w_ih.T,                        # (I, 4H)
        "w_hh_t": w_hh.T,                        # (H, 4H)
        "b": (b_ih + b_hh).reshape(1, 4 * H),    # (1, 4H)
        "w1_t": w1.T,                            # (H, 32)
        "b1": b1.reshape(1, 32),
        "w2_t": w2.T,                            # (32, 5)
        "b2": b2.reshape(1, 5),
    }


def ref_forward(x, params):
    """Pure-JAX reference mirroring PyTorch semantics (for verification)."""
    T, B, I = x.shape
    H = params["w_hh_t"].shape[0]

    def step(carry, xt):
        h, c = carry
        gates = xt @ params["w_ih_t"] + h @ params["w_hh_t"] + params["b"][0]
        i_g = jax.nn.sigmoid(gates[:, 0 * H:1 * H])
        f_g = jax.nn.sigmoid(gates[:, 1 * H:2 * H])
        g_g = jnp.tanh(gates[:, 2 * H:3 * H])
        o_g = jax.nn.sigmoid(gates[:, 3 * H:4 * H])
        c = f_g * c + i_g * g_g
        h = o_g * jnp.tanh(c)
        return (h, c), h

    init = (jnp.zeros((B, H), jnp.float32), jnp.zeros((B, H), jnp.float32))
    _, hs = jax.lax.scan(step, init, x)                         # (T, B, H)
    s = jax.nn.sigmoid(hs)
    z1 = jax.nn.sigmoid(s @ params["w1_t"] + params["b1"][0])
    z2 = z1 @ params["w2_t"] + params["b2"][0]                  # (T, B, 5)
    return jax.nn.softmax(z2, axis=0)                           # legacy dim=0


if __name__ == "__main__":
    T, B, I, H = 8, 2, 16, 32   # small shapes: seq=8, batch=2, input=16, hidden=32

    key = jax.random.PRNGKey(0)
    k_x, k_p = jax.random.split(key)
    x = jax.random.normal(k_x, (T, B, I), jnp.float32)
    params = init_params(k_p, I, H)

    out = activity_lstm_forward(x, params)
    out = jax.block_until_ready(out)

    ref = jax.block_until_ready(ref_forward(x, params))
    np.testing.assert_allclose(np.asarray(out), np.asarray(ref), rtol=1e-4, atol=1e-4)
    assert out.shape == (T, B, 5)
    # Softmax over dim 0: columns sum to 1 across the sequence axis.
    np.testing.assert_allclose(np.asarray(out).sum(axis=0),
                               np.ones((B, 5), np.float32), rtol=1e-4, atol=1e-4)

    print("KERNEL_OK")
</pallas_src>

<mosaic_0001>
module attributes {stable_mosaic.version = 11 : i64} {
  func.func @_activity_lstm_kernel(%arg0: memref<64x16xf32, #tpu.memory_space<vmem>>, %arg1: memref<16x128xf32, #tpu.memory_space<vmem>>, %arg2: memref<32x128xf32, #tpu.memory_space<vmem>>, %arg3: memref<1x128xf32, #tpu.memory_space<vmem>>, %arg4: memref<32x32xf32, #tpu.memory_space<vmem>>, %arg5: memref<1x32xf32, #tpu.memory_space<vmem>>, %arg6: memref<32x5xf32, #tpu.memory_space<vmem>>, %arg7: memref<1x5xf32, #tpu.memory_space<vmem>>, %arg8: memref<64x5xf32, #tpu.memory_space<vmem>>) attributes {dimension_semantics = [], scalar_prefetch = 0 : i64, scratch_operands = 0 : i64, tpu.core_type = #tpu.core_type<tc>} {
    %c0 = arith.constant 0 : index
    %c0_0 = arith.constant 0 : index
    %0 = vector.load %arg2[%c0, %c0_0] : memref<32x128xf32, #tpu.memory_space<vmem>>, vector<32x128xf32>
    %c0_1 = arith.constant 0 : index
    %c0_2 = arith.constant 0 : index
    %1 = vector.load %arg4[%c0_1, %c0_2] : memref<32x32xf32, #tpu.memory_space<vmem>>, vector<32x32xf32>
    %c0_3 = arith.constant 0 : index
    %c0_4 = arith.constant 0 : index
    %2 = vector.load %arg5[%c0_3, %c0_4] : memref<1x32xf32, #tpu.memory_space<vmem>>, vector<1x32xf32>
    %c0_5 = arith.constant 0 : index
    %c0_6 = arith.constant 0 : index
    %3 = vector.load %arg6[%c0_5, %c0_6] : memref<32x5xf32, #tpu.memory_space<vmem>>, vector<32x5xf32>
    %c0_7 = arith.constant 0 : index
    %c0_8 = arith.constant 0 : index
    %4 = vector.load %arg7[%c0_7, %c0_8] : memref<1x5xf32, #tpu.memory_space<vmem>>, vector<1x5xf32>
    %c0_9 = arith.constant 0 : index
    %c0_10 = arith.constant 0 : index
    %5 = vector.load %arg0[%c0_9, %c0_10] : memref<64x16xf32, #tpu.memory_space<vmem>>, vector<64x16xf32>
    %c0_11 = arith.constant 0 : index
    %c0_12 = arith.constant 0 : index
    %6 = vector.load %arg1[%c0_11, %c0_12] : memref<16x128xf32, #tpu.memory_space<vmem>>, vector<16x128xf32>
    %cst = arith.constant dense<0.000000e+00> : vector<64x128xf32>
    %7 = tpu.matmul %5, %6, %cst {dimension_numbers = #tpu.dot_dimension_numbers<[1], [0], [0], [1], [0, 0, 1, 1], [], []>} : vector<64x16xf32>, vector<16x128xf32>, vector<64x128xf32> -> vector<64x128xf32>
    %c0_13 = arith.constant 0 : index
    %c0_14 = arith.constant 0 : index
    %8 = vector.load %arg3[%c0_13, %c0_14] : memref<1x128xf32, #tpu.memory_space<vmem>>, vector<1x128xf32>
    %9 = vector.broadcast %8 : vector<1x128xf32> to vector<64x128xf32>
    %10 = arith.addf %7, %9 : vector<64x128xf32>
    %11 = tpu.iota {dimensions = array<i32: 1>} : vector<8x128xi32>
    %c64_i32 = arith.constant 64 : i32
    %12 = vector.broadcast %c64_i32 : i32 to vector<8x128xi32>
    %13 = arith.cmpi sge, %11, %12 : vector<8x128xi32>
    %c96_i32 = arith.constant 96 : i32
    %14 = vector.broadcast %c96_i32 : i32 to vector<8x128xi32>
    %15 = arith.cmpi slt, %11, %14 : vector<8x128xi32>
    %16 = arith.andi %13, %15 : vector<8x128xi1>
    %cst_15 = arith.constant 1.000000e+00 : f32
    %cst_16 = arith.constant 5.000000e-01 : f32
    %17 = vector.broadcast %cst_15 : f32 to vector<8x128xf32>
    %18 = vector.broadcast %cst_16 : f32 to vector<8x128xf32>
    %19 = arith.select %16, %17, %18 : vector<8x128xi1>, vector<8x128xf32>
    %cst_17 = arith.constant 0.000000e+00 : f32
    %cst_18 = arith.constant 5.000000e-01 : f32
    %20 = vector.broadcast %cst_17 : f32 to vector<8x128xf32>
    %21 = vector.broadcast %cst_18 : f32 to vector<8x128xf32>
    %22 = arith.select %16, %20, %21 : vector<8x128xi1>, vector<8x128xf32>
    %cst_19 = arith.constant 0.000000e+00 : f32
    %23 = vector.broadcast %cst_19 : f32 to vector<8x32xf32>
    %cst_20 = arith.constant 0.000000e+00 : f32
    %24 = vector.broadcast %cst_20 : f32 to vector<8x32xf32>
    %25 = vector.extract_strided_slice %10 {offsets = [0, 0], sizes = [8, 128], strides = [1, 1]} : vector<64x128xf32> to vector<8x128xf32>
    %cst_21 = arith.constant dense<0.000000e+00> : vector<8x128xf32>
    %26 = tpu.matmul %23, %0, %cst_21 {dimension_numbers = #tpu.dot_dimension_numbers<[1], [0], [0], [1], [0, 0, 1, 1], [], []>} : vector<8x32xf32>, vector<32x128xf32>, vector<8x128xf32> -> vector<8x128xf32>
    %27 = arith.addf %25, %26 : vector<8x128xf32>
    %28 = arith.mulf %27, %19 : vector<8x128xf32>
    %29 = math.tanh %28 : vector<8x128xf32>
    %30 = arith.mulf %29, %19 : vector<8x128xf32>
    %31 = arith.addf %30, %22 : vector<8x128xf32>
    %32 = vector.extract_strided_slice %31 {offsets = [0, 0], sizes = [8, 32], strides = [1, 1]} : vector<8x128xf32> to vector<8x32xf32>
    %33 = vector.extract_strided_slice %31 {offsets = [0, 32], sizes = [8, 32], strides = [1, 1]} : vector<8x128xf32> to vector<8x32xf32>
    %34 = vector.extract_strided_slice %31 {offsets = [0, 64], sizes = [8, 32], strides = [1, 1]} : vector<8x128xf32> to vector<8x32xf32>
    %35 = vector.extract_strided_slice %31 {offsets = [0, 96], sizes = [8, 32], strides = [1, 1]} : vector<8x128xf32> to vector<8x32xf32>
    %36 = arith.mulf %33, %24 : vector<8x32xf32>
    %37 = arith.mulf %32, %34 : vector<8x32xf32>
    %38 = arith.addf %36, %37 : vector<8x32xf32>
    %39 = math.tanh %38 : vector<8x32xf32>
    %40 = arith.mulf %35, %39 : vector<8x32xf32>
    %41 = vector.extract_strided_slice %10 {offsets = [8, 0], sizes = [8, 128], strides = [1, 1]} : vector<64x128xf32> to vector<8x128xf32>
    %cst_22 = arith.constant dense<0.000000e+00> : vector<8x128xf32>
    %42 = tpu.matmul %40, %0, %cst_22 {dimension_numbers = #tpu.dot_dimension_numbers<[1], [0], [0], [1], [0, 0, 1, 1], [], []>} : vector<8x32xf32>, vector<32x128xf32>, vector<8x128xf32> -> vector<8x128xf32>
    %43 = arith.addf %41, %42 : vector<8x128xf32>
    %44 = arith.mulf %43, %19 : vector<8x128xf32>
    %45 = math.tanh %44 : vector<8x128xf32>
    %46 = arith.mulf %45, %19 : vector<8x128xf32>
    %47 = arith.addf %46, %22 : vector<8x128xf32>
    %48 = vector.extract_strided_slice %47 {offsets = [0, 0], sizes = [8, 32], strides = [1, 1]} : vector<8x128xf32> to vector<8x32xf32>
    %49 = vector.extract_strided_slice %47 {offsets = [0, 32], sizes = [8, 32], strides = [1, 1]} : vector<8x128xf32> to vector<8x32xf32>
    %50 = vector.extract_strided_slice %47 {offsets = [0, 64], sizes = [8, 32], strides = [1, 1]} : vector<8x128xf32> to vector<8x32xf32>
    %51 = vector.extract_strided_slice %47 {offsets = [0, 96], sizes = [8, 32], strides = [1, 1]} : vector<8x128xf32> to vector<8x32xf32>
    %52 = arith.mulf %49, %38 : vector<8x32xf32>
    %53 = arith.mulf %48, %50 : vector<8x32xf32>
    %54 = arith.addf %52, %53 : vector<8x32xf32>
    %55 = math.tanh %54 : vector<8x32xf32>
    %56 = arith.mulf %51, %55 : vector<8x32xf32>
    %57 = vector.extract_strided_slice %10 {offsets = [16, 0], sizes = [8, 128], strides = [1, 1]} : vector<64x128xf32> to vector<8x128xf32>
    %cst_23 = arith.constant dense<0.000000e+00> : vector<8x128xf32>
    %58 = tpu.matmul %56, %0, %cst_23 {dimension_numbers = #tpu.dot_dimension_numbers<[1], [0], [0], [1], [0, 0, 1, 1], [], []>} : vector<8x32xf32>, vector<32x128xf32>, vector<8x128xf32> -> vector<8x128xf32>
    %59 = arith.addf %57, %58 : vector<8x128xf32>
    %60 = arith.mulf %59, %19 : vector<8x128xf32>
    %61 = math.tanh %60 : vector<8x128xf32>
    %62 = arith.mulf %61, %19 : vector<8x128xf32>
    %63 = arith.addf %62, %22 : vector<8x128xf32>
    %64 = vector.extract_strided_slice %63 {offsets = [0, 0], sizes = [8, 32], strides = [1, 1]} : vector<8x128xf32> to vector<8x32xf32>
    %65 = vector.extract_strided_slice %63 {offsets = [0, 32], sizes = [8, 32], strides = [1, 1]} : vector<8x128xf32> to vector<8x32xf32>
    %66 = vector.extract_strided_slice %63 {offsets = [0, 64], sizes = [8, 32], strides = [1, 1]} : vector<8x128xf32> to vector<8x32xf32>
    %67 = vector.extract_strided_slice %63 {offsets = [0, 96], sizes = [8, 32], strides = [1, 1]} : vector<8x128xf32> to vector<8x32xf32>
    %68 = arith.mulf %65, %54 : vector<8x32xf32>
    %69 = arith.mulf %64, %66 : vector<8x32xf32>
    %70 = arith.addf %68, %69 : vector<8x32xf32>
    %71 = math.tanh %70 : vector<8x32xf32>
    %72 = arith.mulf %67, %71 : vector<8x32xf32>
    %73 = vector.extract_strided_slice %10 {offsets = [24, 0], sizes = [8, 128], strides = [1, 1]} : vector<64x128xf32> to vector<8x128xf32>
    %cst_24 = arith.constant dense<0.000000e+00> : vector<8x128xf32>
    %74 = tpu.matmul %72, %0, %cst_24 {dimension_numbers = #tpu.dot_dimension_numbers<[1], [0], [0], [1], [0, 0, 1, 1], [], []>} : vector<8x32xf32>, vector<32x128xf32>, vector<8x128xf32> -> vector<8x128xf32>
    %75 = arith.addf %73, %74 : vector<8x128xf32>
    %76 = arith.mulf %75, %19 : vector<8x128xf32>
    %77 = math.tanh %76 : vector<8x128xf32>
    %78 = arith.mulf %77, %19 : vector<8x128xf32>
    %79 = arith.addf %78, %22 : vector<8x128xf32>
    %80 = vector.extract_strided_slice %79 {offsets = [0, 0], sizes = [8, 32], strides = [1, 1]} : vector<8x128xf32> to vector<8x32xf32>
    %81 = vector.extract_strided_slice %79 {offsets = [0, 32], sizes = [8, 32], strides = [1, 1]} : vector<8x128xf32> to vector<8x32xf32>
    %82 = vector.extract_strided_slice %79 {offsets = [0, 64], sizes = [8, 32], strides = [1, 1]} : vector<8x128xf32> to vector<8x32xf32>
    %83 = vector.extract_strided_slice %79 {offsets = [0, 96], sizes = [8, 32], strides = [1, 1]} : vector<8x128xf32> to vector<8x32xf32>
    %84 = arith.mulf %81, %70 : vector<8x32xf32>
    %85 = arith.mulf %80, %82 : vector<8x32xf32>
    %86 = arith.addf %84, %85 : vector<8x32xf32>
    %87 = math.tanh %86 : vector<8x32xf32>
    %88 = arith.mulf %83, %87 : vector<8x32xf32>
    %89 = vector.extract_strided_slice %10 {offsets = [32, 0], sizes = [8, 128], strides = [1, 1]} : vector<64x128xf32> to vector<8x128xf32>
    %cst_25 = arith.constant dense<0.000000e+00> : vector<8x128xf32>
    %90 = tpu.matmul %88, %0, %cst_25 {dimension_numbers = #tpu.dot_dimension_numbers<[1], [0], [0], [1], [0, 0, 1, 1], [], []>} : vector<8x32xf32>, vector<32x128xf32>, vector<8x128xf32> -> vector<8x128xf32>
    %91 = arith.addf %89, %90 : vector<8x128xf32>
    %92 = arith.mulf %91, %19 : vector<8x128xf32>
    %93 = math.tanh %92 : vector<8x128xf32>
    %94 = arith.mulf %93, %19 : vector<8x128xf32>
    %95 = arith.addf %94, %22 : vector<8x128xf32>
    %96 = vector.extract_strided_slice %95 {offsets = [0, 0], sizes = [8, 32], strides = [1, 1]} : vector<8x128xf32> to vector<8x32xf32>
    %97 = vector.extract_strided_slice %95 {offsets = [0, 32], sizes = [8, 32], strides = [1, 1]} : vector<8x128xf32> to vector<8x32xf32>
    %98 = vector.extract_strided_slice %95 {offsets = [0, 64], sizes = [8, 32], strides = [1, 1]} : vector<8x128xf32> to vector<8x32xf32>
    %99 = vector.extract_strided_slice %95 {offsets = [0, 96], sizes = [8, 32], strides = [1, 1]} : vector<8x128xf32> to vector<8x32xf32>
    %100 = arith.mulf %97, %86 : vector<8x32xf32>
    %101 = arith.mulf %96, %98 : vector<8x32xf32>
    %102 = arith.addf %100, %101 : vector<8x32xf32>
    %103 = math.tanh %102 : vector<8x32xf32>
    %104 = arith.mulf %99, %103 : vector<8x32xf32>
    %105 = vector.extract_strided_slice %10 {offsets = [40, 0], sizes = [8, 128], strides = [1, 1]} : vector<64x128xf32> to vector<8x128xf32>
    %cst_26 = arith.constant dense<0.000000e+00> : vector<8x128xf32>
    %106 = tpu.matmul %104, %0, %cst_26 {dimension_numbers = #tpu.dot_dimension_numbers<[1], [0], [0], [1], [0, 0, 1, 1], [], []>} : vector<8x32xf32>, vector<32x128xf32>, vector<8x128xf32> -> vector<8x128xf32>
    %107 = arith.addf %105, %106 : vector<8x128xf32>
    %108 = arith.mulf %107, %19 : vector<8x128xf32>
    %109 = math.tanh %108 : vector<8x128xf32>
    %110 = arith.mulf %109, %19 : vector<8x128xf32>
    %111 = arith.addf %110, %22 : vector<8x128xf32>
    %112 = vector.extract_strided_slice %111 {offsets = [0, 0], sizes = [8, 32], strides = [1, 1]} : vector<8x128xf32> to vector<8x32xf32>
    %113 = vector.extract_strided_slice %111 {offsets = [0, 32], sizes = [8, 32], strides = [1, 1]} : vector<8x128xf32> to vector<8x32xf32>
    %114 = vector.extract_strided_slice %111 {offsets = [0, 64], sizes = [8, 32], strides = [1, 1]} : vector<8x128xf32> to vector<8x32xf32>
    %115 = vector.extract_strided_slice %111 {offsets = [0, 96], sizes = [8, 32], strides = [1, 1]} : vector<8x128xf32> to vector<8x32xf32>
    %116 = arith.mulf %113, %102 : vector<8x32xf32>
    %117 = arith.mulf %112, %114 : vector<8x32xf32>
    %118 = arith.addf %116, %117 : vector<8x32xf32>
    %119 = math.tanh %118 : vector<8x32xf32>
    %120 = arith.mulf %115, %119 : vector<8x32xf32>
    %121 = vector.extract_strided_slice %10 {offsets = [48, 0], sizes = [8, 128], strides = [1, 1]} : vector<64x128xf32> to vector<8x128xf32>
    %cst_27 = arith.constant dense<0.000000e+00> : vector<8x128xf32>
    %122 = tpu.matmul %120, %0, %cst_27 {dimension_numbers = #tpu.dot_dimension_numbers<[1], [0], [0], [1], [0, 0, 1, 1], [], []>} : vector<8x32xf32>, vector<32x128xf32>, vector<8x128xf32> -> vector<8x128xf32>
    %123 = arith.addf %121, %122 : vector<8x128xf32>
    %124 = arith.mulf %123, %19 : vector<8x128xf32>
    %125 = math.tanh %124 : vector<8x128xf32>
    %126 = arith.mulf %125, %19 : vector<8x128xf32>
    %127 = arith.addf %126, %22 : vector<8x128xf32>
    %128 = vector.extract_strided_slice %127 {offsets = [0, 0], sizes = [8, 32], strides = [1, 1]} : vector<8x128xf32> to vector<8x32xf32>
    %129 = vector.extract_strided_slice %127 {offsets = [0, 32], sizes = [8, 32], strides = [1, 1]} : vector<8x128xf32> to vector<8x32xf32>
    %130 = vector.extract_strided_slice %127 {offsets = [0, 64], sizes = [8, 32], strides = [1, 1]} : vector<8x128xf32> to vector<8x32xf32>
    %131 = vector.extract_strided_slice %127 {offsets = [0, 96], sizes = [8, 32], strides = [1, 1]} : vector<8x128xf32> to vector<8x32xf32>
    %132 = arith.mulf %129, %118 : vector<8x32xf32>
    %133 = arith.mulf %128, %130 : vector<8x32xf32>
    %134 = arith.addf %132, %133 : vector<8x32xf32>
    %135 = math.tanh %134 : vector<8x32xf32>
    %136 = arith.mulf %131, %135 : vector<8x32xf32>
    %137 = vector.extract_strided_slice %10 {offsets = [56, 0], sizes = [8, 128], strides = [1, 1]} : vector<64x128xf32> to vector<8x128xf32>
    %cst_28 = arith.constant dense<0.000000e+00> : vector<8x128xf32>
    %138 = tpu.matmul %136, %0, %cst_28 {dimension_numbers = #tpu.dot_dimension_numbers<[1], [0], [0], [1], [0, 0, 1, 1], [], []>} : vector<8x32xf32>, vector<32x128xf32>, vector<8x128xf32> -> vector<8x128xf32>
    %139 = arith.addf %137, %138 : vector<8x128xf32>
    %140 = arith.mulf %139, %19 : vector<8x128xf32>
    %141 = math.tanh %140 : vector<8x128xf32>
    %142 = arith.mulf %141, %19 : vector<8x128xf32>
    %143 = arith.addf %142, %22 : vector<8x128xf32>
    %144 = vector.extract_strided_slice %143 {offsets = [0, 0], sizes = [8, 32], strides = [1, 1]} : vector<8x128xf32> to vector<8x32xf32>
    %145 = vector.extract_strided_slice %143 {offsets = [0, 32], sizes = [8, 32], strides = [1, 1]} : vector<8x128xf32> to vector<8x32xf32>
    %146 = vector.extract_strided_slice %143 {offsets = [0, 64], sizes = [8, 32], strides = [1, 1]} : vector<8x128xf32> to vector<8x32xf32>
    %147 = vector.extract_strided_slice %143 {offsets = [0, 96], sizes = [8, 32], strides = [1, 1]} : vector<8x128xf32> to vector<8x32xf32>
    %148 = arith.mulf %145, %134 : vector<8x32xf32>
    %149 = arith.mulf %144, %146 : vector<8x32xf32>
    %150 = arith.addf %148, %149 : vector<8x32xf32>
    %151 = math.tanh %150 : vector<8x32xf32>
    %152 = arith.mulf %147, %151 : vector<8x32xf32>
    %153 = tpu.concatenate %40, %56, %72, %88, %104, %120, %136, %152 in 0 : vector<8x32xf32>, vector<8x32xf32>, vector<8x32xf32>, vector<8x32xf32>, vector<8x32xf32>, vector<8x32xf32>, vector<8x32xf32>, vector<8x32xf32> -> vector<64x32xf32>
    %154 = arith.negf %153 : vector<64x32xf32>
    %155 = math.exp %154 : vector<64x32xf32>
    %cst_29 = arith.constant 1.000000e+00 : f32
    %156 = vector.broadcast %cst_29 : f32 to vector<64x32xf32>
    %157 = arith.addf %156, %155 : vector<64x32xf32>
    %158 = arith.divf %156, %157 : vector<64x32xf32>
    %cst_30 = arith.constant dense<0.000000e+00> : vector<64x32xf32>
    %159 = tpu.matmul %158, %1, %cst_30 {dimension_numbers = #tpu.dot_dimension_numbers<[1], [0], [0], [1], [0, 0, 1, 1], [], []>} : vector<64x32xf32>, vector<32x32xf32>, vector<64x32xf32> -> vector<64x32xf32>
    %160 = vector.broadcast %2 : vector<1x32xf32> to vector<64x32xf32>
    %161 = arith.addf %159, %160 : vector<64x32xf32>
    %162 = arith.negf %161 : vector<64x32xf32>
    %163 = math.exp %162 : vector<64x32xf32>
    %cst_31 = arith.constant 1.000000e+00 : f32
    %164 = vector.broadcast %cst_31 : f32 to vector<64x32xf32>
    %165 = arith.addf %164, %163 : vector<64x32xf32>
    %166 = arith.divf %164, %165 : vector<64x32xf32>
    %cst_32 = arith.constant dense<0.000000e+00> : vector<64x5xf32>
    %167 = tpu.matmul %166, %3, %cst_32 {dimension_numbers = #tpu.dot_dimension_numbers<[1], [0], [0], [1], [0, 0, 1, 1], [], []>} : vector<64x32xf32>, vector<32x5xf32>, vector<64x5xf32> -> vector<64x5xf32>
    %168 = vector.broadcast %4 : vector<1x5xf32> to vector<64x5xf32>
    %169 = arith.addf %167, %168 : vector<64x5xf32>
    %170 = vector.extract_strided_slice %169 {offsets = [0, 0], sizes = [8, 5], strides = [1, 1]} : vector<64x5xf32> to vector<8x5xf32>
    %171 = vector.extract_strided_slice %169 {offsets = [8, 0], sizes = [8, 5], strides = [1, 1]} : vector<64x5xf32> to vector<8x5xf32>
    %172 = vector.extract_strided_slice %169 {offsets = [16, 0], sizes = [8, 5], strides = [1, 1]} : vector<64x5xf32> to vector<8x5xf32>
    %173 = vector.extract_strided_slice %169 {offsets = [24, 0], sizes = [8, 5], strides = [1, 1]} : vector<64x5xf32> to vector<8x5xf32>
    %174 = vector.extract_strided_slice %169 {offsets = [32, 0], sizes = [8, 5], strides = [1, 1]} : vector<64x5xf32> to vector<8x5xf32>
    %175 = vector.extract_strided_slice %169 {offsets = [40, 0], sizes = [8, 5], strides = [1, 1]} : vector<64x5xf32> to vector<8x5xf32>
    %176 = vector.extract_strided_slice %169 {offsets = [48, 0], sizes = [8, 5], strides = [1, 1]} : vector<64x5xf32> to vector<8x5xf32>
    %177 = vector.extract_strided_slice %169 {offsets = [56, 0], sizes = [8, 5], strides = [1, 1]} : vector<64x5xf32> to vector<8x5xf32>
    %178 = arith.maximumf %170, %171 : vector<8x5xf32>
    %179 = arith.maximumf %178, %172 : vector<8x5xf32>
    %180 = arith.maximumf %179, %173 : vector<8x5xf32>
    %181 = arith.maximumf %180, %174 : vector<8x5xf32>
    %182 = arith.maximumf %181, %175 : vector<8x5xf32>
    %183 = arith.maximumf %182, %176 : vector<8x5xf32>
    %184 = arith.maximumf %183, %177 : vector<8x5xf32>
    %185 = arith.subf %170, %184 : vector<8x5xf32>
    %186 = math.exp %185 : vector<8x5xf32>
    %187 = arith.subf %171, %184 : vector<8x5xf32>
    %188 = math.exp %187 : vector<8x5xf32>
    %189 = arith.subf %172, %184 : vector<8x5xf32>
    %190 = math.exp %189 : vector<8x5xf32>
    %191 = arith.subf %173, %184 : vector<8x5xf32>
    %192 = math.exp %191 : vector<8x5xf32>
    %193 = arith.subf %174, %184 : vector<8x5xf32>
    %194 = math.exp %193 : vector<8x5xf32>
    %195 = arith.subf %175, %184 : vector<8x5xf32>
    %196 = math.exp %195 : vector<8x5xf32>
    %197 = arith.subf %176, %184 : vector<8x5xf32>
    %198 = math.exp %197 : vector<8x5xf32>
    %199 = arith.subf %177, %184 : vector<8x5xf32>
    %200 = math.exp %199 : vector<8x5xf32>
    %201 = arith.addf %186, %188 : vector<8x5xf32>
    %202 = arith.addf %201, %190 : vector<8x5xf32>
    %203 = arith.addf %202, %192 : vector<8x5xf32>
    %204 = arith.addf %203, %194 : vector<8x5xf32>
    %205 = arith.addf %204, %196 : vector<8x5xf32>
    %206 = arith.addf %205, %198 : vector<8x5xf32>
    %207 = arith.addf %206, %200 : vector<8x5xf32>
    %208 = tpu.reciprocal %207 {approx = true} : vector<8x5xf32> -> vector<8x5xf32>
    %209 = arith.mulf %207, %208 : vector<8x5xf32>
    %cst_33 = arith.constant 2.000000e+00 : f32
    %210 = vector.broadcast %cst_33 : f32 to vector<8x5xf32>
    %211 = arith.subf %210, %209 : vector<8x5xf32>
    %212 = arith.mulf %208, %211 : vector<8x5xf32>
    %213 = arith.mulf %186, %212 : vector<8x5xf32>
    %214 = arith.mulf %188, %212 : vector<8x5xf32>
    %215 = arith.mulf %190, %212 : vector<8x5xf32>
    %216 = arith.mulf %192, %212 : vector<8x5xf32>
    %217 = arith.mulf %194, %212 : vector<8x5xf32>
    %218 = arith.mulf %196, %212 : vector<8x5xf32>
    %219 = arith.mulf %198, %212 : vector<8x5xf32>
    %220 = arith.mulf %200, %212 : vector<8x5xf32>
    %221 = tpu.concatenate %213, %214, %215, %216, %217, %218, %219, %220 in 0 : vector<8x5xf32>, vector<8x5xf32>, vector<8x5xf32>, vector<8x5xf32>, vector<8x5xf32>, vector<8x5xf32>, vector<8x5xf32>, vector<8x5xf32> -> vector<64x5xf32>
    %c0_34 = arith.constant 0 : index
    %c0_35 = arith.constant 0 : index
    %222 = vector.load %arg8[%c0_34, %c0_35] : memref<64x5xf32, #tpu.memory_space<vmem>>, vector<64x5xf32>
    tpu.vector_store %arg8[%c0_34, %c0_35], %221 {strides = array<i32>} : memref<64x5xf32, #tpu.memory_space<vmem>>, vector<64x5xf32>,
    return
  }
}

</mosaic_0001>

<bundles_post_ra>
// kernel: tpu_custom_call.1
= control target key start
LH: loop header
LB: loop body
LE: loop exit
PB: predicated region body
PF: predicated region fallthrough
CT: control target
= control target key end

     0   :  { %v1804_v0 = vmov 0.0   ;;  %vm1805_vm0 = vmmov 0   ;;  %vm60_vm1 = vcmask 130048   ;;  %v190_v9 = vlaneseq  ;;  %s1808_s21 = smov 32   ;;  %s2204_s1 = inlined_call_operand.vmem [shape: f32[16,128], index: 1, kind: input, shape index: {}]   ;;  %s2205_s2 = inlined_call_operand.vmem [shape: f32[32,128], index: 2, kind: input, shape index: {}]   ;;  %s2206_s0 = inlined_call_operand.vmem [shape: f32[64,16], index: 0, kind: input, shape index: {}]   ;;  %s2207_s3 = inlined_call_operand.vmem [shape: f32[1,128], index: 3, kind: input, shape index: {}]   ;;  %s2208_s4 = inlined_call_operand.vmem [shape: f32[32,32], index: 4, kind: input, shape index: {}]   ;;  %s2209_s6 = inlined_call_operand.vmem [shape: f32[32,5], index: 6, kind: input, shape index: {}]   ;;  %s2210_s5 = inlined_call_operand.vmem [shape: f32[1,32], index: 5, kind: input, shape index: {}]   ;;  %s2211_s7 = inlined_call_operand.vmem [shape: f32[1,5], index: 7, kind: input, shape index: {}]   ;;  %s2212_s8 = inlined_call_operand.vmem [shape: f32[64,5], index: 8, kind: output, shape index: {}]  }
   0x1   :  { %1557 = vmatprep.subr.mxu1 %v1804_v0  ;;  %v52_v1 = vld [vmem:[%s2204_s1 + $0x8] sm:$0xff]  ;;  %v1861_v2 = vld [vmem:[%s2205_s2 + $0x18] sm:$0xff]  ;;  %v51_v3 = vld [vmem:[%s2204_s1] sm:$0xff]  ;;  %1565 = vmatprep.mubr.msk.f32.mxu1 %vm1805_vm0, %v1804_v0  ;;  %v1806_v15 = vmov 0.5   ;;  %vm197_vm5 = vcmask 261120   ;;  %vm1404_vm6 = vcmask 39936  }
   0x2   :  { %1541 = vmatprep.subr.mxu0 %v52_v1  ;;  %1558 = vmatpush3.msra.mxu1 %v1861_v2  ;;  %v1872_v4 = vld [vmem:[%s2205_s2 + $0x10] sm:$0xff]  ;;  %v43_v5 = vld [vmem:[%s2206_s0] sm:$0xff]  ;;  %v44_v6 = vld [vmem:[%s2206_s0 + $0x8] sm:$0xff]  ;;  %v191_v10 = vand.u32 127, %v190_v9 }
   0x3   :  { %1542 = vmatpush3.msra.mxu0 %v52_v1  ;;  %1559 = vmatprep.subr.mxu1 %v1804_v0  ;;  %v1885_v7 = vld [vmem:[%s2205_s2 + $0x8] sm:$0xff]  ;;  %v1893_v8 = vld [vmem:[%s2205_s2] sm:$0xff]  ;;  %v45_v48 = vld [vmem:[%s2206_s0 + $0x10] sm:$0xff] }
   0x4   :  { %1543 = vmatprep.subr.mxu0 %v51_v3  ;;  %1560 = vmatpush3.msra.mxu1 %v1872_v4  ;;  %vm192_vm2 = vcmp.ge.s32.totalorder %v191_v10, 64  ;;  %vm193_vm3 = vcmp.lt.s32.totalorder %v191_v10, 96  ;;  %v1922_v12 = vld [vmem:[%s2207_s3] ss:$0 sm:$0xff]  ;;  %s1807_s3 = smov 64   ;;  %v46_v49 = vld [vmem:[%s2206_s0 + $0x18] sm:$0xff] }
   0x5   :  { %1544 = vmatpush3.msra.mxu0 %v51_v3  ;;  %1545 = vmatprep.mubr.msk.f32.mxu0 %vm60_vm1, %v43_v5  ;;  %vm194_vm4 = vmand %vm192_vm2, %vm193_vm3  ;;  %v47_v50 = vld [vmem:[%s2206_s0 + $0x20] sm:$0xff]  ;;  %v48_v51 = vld [vmem:[%s2206_s0 + $0x28] sm:$0xff] }
   0x6   :  { %1561 = vmatprep.subr.mxu1 %v1804_v0  ;;  %1546 = vmatmul.mubr.msk.f32.vlgmr.msra.gmra.mxu0 %vm60_vm1, %v44_v6  ;;  %v1925_v16 = vsel %vm194_vm4, 1.0, %v1806_v15  ;;  %v1928_v22 = vsel %vm194_vm4, 0.0, %v1806_v15  ;;  %v49_v52 = vld [vmem:[%s2206_s0 + $0x30] sm:$0xff]  ;;  %v50_v53 = vld [vmem:[%s2206_s0 + $0x38] sm:$0xff] }
   0x7   :  { %1562 = vmatpush3.msra.mxu1 %v1885_v7  ;;  %1579 = vmatprep.subr.mxu0 %v1804_v0 }
   0x8   :  { %1563 = vmatprep.subr.mxu1 %v1804_v0  ;;  %1580 = vmatpush3.msra.mxu0 %v1861_v2 }
   0x9   :  { %1564 = vmatpush3.msra.mxu1 %v1893_v8  ;;  %1581 = vmatprep.subr.mxu0 %v1804_v0 }
   0xa   :  { %1566 = vmatmul.mubr.f32.vlgmr.msra.gmra.mxu1 %v1804_v0  ;;  %1568 = vmatprep.subr.mxu1 %v1804_v0 }
   0xb   :  { %1569 = vmatpush3.msra.mxu1 %v1861_v2  ;;  %1576 = vmatprep.mubr.msk.f32.mxu1 %vm1805_vm0, %v1804_v0 }
   0xc   :  { %1570 = vmatprep.subr.mxu1 %v1804_v0  ;;  %1582 = vmatpush3.msra.mxu0 %v1872_v4 }
   0xd   :  { %1571 = vmatpush3.msra.mxu1 %v1872_v4  ;;  %1583 = vmatprep.subr.mxu0 %v1804_v0 }
   0xe   :  { %1572 = vmatprep.subr.mxu1 %v1804_v0  ;;  %1584 = vmatpush3.msra.mxu0 %v1885_v7 }
   0xf   :  { %1573 = vmatpush3.msra.mxu1 %v1885_v7  ;;  %1585 = vmatprep.subr.mxu0 %v1804_v0 }
  0x10   :  { %1574 = vmatprep.subr.mxu1 %v1804_v0  ;;  %1586 = vmatpush3.msra.mxu0 %v1893_v8 }
  0x11   :  { %1575 = vmatpush3.msra.mxu1 %v1893_v8  ;;  %1601 = vmatprep.subr.mxu0 %v1804_v0 }
  0x12   :  { %1590 = vmatprep.subr.mxu1 %v1804_v0  ;;  %1548 = vmatprep.mubr.msk.f32.mxu0 %vm60_vm1, %v45_v48 }
  0x13   :  { %1549 = vmatmul.mubr.msk.f32.gmra.mxu0 %vm60_vm1, %v46_v49 }
  0x14   :  { %1551 = vmatprep.mubr.msk.f32.mxu0 %vm60_vm1, %v47_v50 }
  0x17   :  { %1552 = vmatmul.mubr.msk.f32.gmra.mxu0 %vm60_vm1, %v48_v51 }
  0x18   :  { %1554 = vmatprep.mubr.msk.f32.mxu0 %vm60_vm1, %v49_v52 }
  0x1b   :  { %1555 = vmatmul.mubr.msk.f32.gmra.mxu0 %vm60_vm1, %v50_v53 }
  0x1c   :  { %1587 = vmatprep.mubr.msk.f32.mxu0 %vm1805_vm0, %v1804_v0 }
  0xc6   :  { %v1547_v11 = vpop.f32.mrf.mxu0 }
  0xc7   :  { %v157_v34 = vadd.f32 %v1547_v11, %v1922_v12 }
  0xc8   :  { %v151_v13 = vpop.f32.mrf.mxu0 }
  0xc9   :  { %v152_v14 = vadd.f32 %v1922_v12, %v151_v13 }
  0xca   :  { %v267_v17 = vpop.f32.mrf.mxu1 }
  0xcb   :  { %v271_v18 = vadd.f32 %v267_v17, %v152_v14 }
  0xcc   :  { %v1567_v19 = vpop.f32.mrf.mxu1 }
  0xcd   :  { %v272_v20 = vmul.f32 %v271_v18, %v1925_v16 }
  0xcf   :  { %1690 = vtanh.f32 %v272_v20 }
  0xd3   :  { %v1550_v57 = vpop.f32.mrf.mxu0 }
  0xd5   :  { %v161_v58 = vpop.f32.mrf.mxu0 }
  0xd6   :  { %v162_v63 = vadd.f32 %v1922_v12, %v161_v58 }
  0xd7   :  { %v1998_v59 = vpop.f32.mrf.mxu0 }
  0xd9   :  { %v2000_v60 = vpop.f32.mrf.mxu0 }
  0xdb   :  { %v2002_v61 = vpop.f32.mrf.mxu0 }
  0xdc   :  { %v1691_v21 = vpop.eup %1690 }
  0xdd   :  { %v274_v23 = vmul.f32 %v1691_v21, %v1925_v16  ;;  %v2004_v62 = vpop.f32.mrf.mxu0 }
  0xdf   :  { %v275_v24 = vadd.f32 %v274_v23, %v1928_v22 }
  0xe1   :  { %278 = vrot.lane.b32.xlu0 %v275_v24, %s1807_s3  ;;  %v276_v27 = vmul.f32 0.0, %v275_v24 }
 0x153   :  { %v279_v25 = vpop.permute.xlu0 %278 }
 0x154   :  { %v281_v26 = vmul.f32 %v279_v25, %v275_v24 }
 0x156   :  { %283 = vrot.lane.b32.xlu0 %v281_v26, %s1808_s21 }
 0x1c8   :  { %v284_v28 = vpop.permute.xlu0 %283 }
 0x1c9   :  { %v286_v29 = vadd.f32 %v284_v28, %v276_v27 }
 0x1cb   :  { %1692 = vtanh.f32 %v286_v29 }
 0x1d8   :  { %v1693_v30 = vpop.eup %1692 }
 0x1d9   :  { %289 = vrot.lane.b32.xlu1 %v1693_v30, %s1807_s3 }
 0x24b   :  { %v290_v31 = vpop.permute.xlu1 %289 }
 0x24c   :  { %v1935_v32 = vmul.f32 %v290_v31, %v275_v24  ;;  %v167_v24 = vadd.f32 %v1550_v57, %v1922_v12 }
 0x24e   :  { %294 = vrot.lane.b32.xlu1 %v1935_v32, %s1808_s21 }
 0x2c0   :  { %v295_v33 = vpop.permute.xlu1 %294 }
 0x2c1   :  { %1577 = vmatmul.mubr.msk.f32.vlgmr.msra.gmra.mxu1 %vm197_vm5, %v295_v33 }
 0x2c2   :  { %1591 = vmatpush3.msra.mxu1 %v1861_v2  ;;  %1598 = vmatprep.mubr.msk.f32.mxu1 %vm1805_vm0, %v1804_v0 }
 0x2c3   :  { %1592 = vmatprep.subr.mxu1 %v1804_v0 }
 0x2c4   :  { %1593 = vmatpush3.msra.mxu1 %v1872_v4 }
 0x2c5   :  { %1594 = vmatprep.subr.mxu1 %v1804_v0 }
 0x2c6   :  { %1595 = vmatpush3.msra.mxu1 %v1885_v7 }
 0x2c7   :  { %1596 = vmatprep.subr.mxu1 %v1804_v0 }
 0x2c8   :  { %1597 = vmatpush3.msra.mxu1 %v1893_v8 }
 0x2c9   :  { %1612 = vmatprep.subr.mxu1 %v1804_v0 }
 0x381   :  { %v364_v35 = vpop.f32.mrf.mxu1 }
 0x382   :  { %v368_v36 = vadd.f32 %v364_v35, %v157_v34 }
 0x383   :  { %v1578_v37 = vpop.f32.mrf.mxu1 }
 0x384   :  { %v369_v38 = vmul.f32 %v368_v36, %v1925_v16 }
 0x386   :  { %1694 = vtanh.f32 %v369_v38 }
 0x393   :  { %v1695_v39 = vpop.eup %1694 }
 0x394   :  { %v371_v40 = vmul.f32 %v1695_v39, %v1925_v16 }
 0x396   :  { %v372_v41 = vadd.f32 %v371_v40, %v1928_v22 }
 0x398   :  { %375 = vrot.lane.b32.xlu0 %v372_v41, %s1807_s3  ;;  %v373_v44 = vmul.f32 %v372_v41, %v286_v29 }
 0x40a   :  { %v376_v42 = vpop.permute.xlu0 %375 }
 0x40b   :  { %v378_v43 = vmul.f32 %v376_v42, %v372_v41  ;;  %v172_v42 = vadd.f32 %v1922_v12, %v2000_v60 }
 0x40d   :  { %380 = vrot.lane.b32.xlu1 %v378_v43, %s1808_s21 }
 0x47f   :  { %v381_v45 = vpop.permute.xlu1 %380 }
 0x480   :  { %v383_v46 = vadd.f32 %v381_v45, %v373_v44 }
 0x482   :  { %1696 = vtanh.f32 %v383_v46 }
 0x48f   :  { %v1697_v47 = vpop.eup %1696 }
 0x490   :  { %386 = vrot.lane.b32.xlu0 %v1697_v47, %s1807_s3 }
 0x502   :  { %v387_v54 = vpop.permute.xlu0 %386 }
 0x503   :  { %v1983_v55 = vmul.f32 %v387_v54, %v372_v41 }
 0x505   :  { %391 = vrot.lane.b32.xlu1 %v1983_v55, %s1808_s21 }
 0x577   :  { %v392_v56 = vpop.permute.xlu1 %391 }
 0x578   :  { %1588 = vmatmul.mubr.msk.f32.vlgmr.msra.gmra.mxu0 %vm197_vm5, %v392_v56 }
 0x579   :  { %1602 = vmatpush3.msra.mxu0 %v1861_v2  ;;  %1609 = vmatprep.mubr.msk.f32.mxu0 %vm1805_vm0, %v1804_v0 }
 0x57a   :  { %1603 = vmatprep.subr.mxu0 %v1804_v0 }
 0x57b   :  { %1604 = vmatpush3.msra.mxu0 %v1872_v4 }
 0x57c   :  { %1605 = vmatprep.subr.mxu0 %v1804_v0 }
 0x57d   :  { %1606 = vmatpush3.msra.mxu0 %v1885_v7 }
 0x57e   :  { %1607 = vmatprep.subr.mxu0 %v1804_v0 }
 0x57f   :  { %1608 = vmatpush3.msra.mxu0 %v1893_v8 }
 0x580   :  { %1623 = vmatprep.subr.mxu0 %v1804_v0 }
 0x638   :  { %v461_v1 = vpop.f32.mrf.mxu0 }
 0x639   :  { %v465_v3 = vadd.f32 %v461_v1, %v162_v63  ;;  %v177_v63 = vadd.f32 %v1998_v59, %v1922_v12 }
 0x63a   :  { %v1589_v5 = vpop.f32.mrf.mxu0 }
 0x63b   :  { %v466_v6 = vmul.f32 %v465_v3, %v1925_v16 }
 0x63d   :  { %1698 = vtanh.f32 %v466_v6 }
 0x64a   :  { %v1699_v9 = vpop.eup %1698 }
 0x64b   :  { %v468_v10 = vmul.f32 %v1699_v9, %v1925_v16 }
 0x64d   :  { %v469_v11 = vadd.f32 %v468_v10, %v1928_v22 }
 0x64f   :  { %472 = vrot.lane.b32.xlu0 %v469_v11, %s1807_s3  ;;  %v470_v15 = vmul.f32 %v469_v11, %v383_v46 }
 0x6c1   :  { %v473_v13 = vpop.permute.xlu0 %472 }
 0x6c2   :  { %v475_v14 = vmul.f32 %v473_v13, %v469_v11 }
 0x6c4   :  { %477 = vrot.lane.b32.xlu1 %v475_v14, %s1808_s21 }
 0x736   :  { %v478_v17 = vpop.permute.xlu1 %477 }
 0x737   :  { %v480_v18 = vadd.f32 %v478_v17, %v470_v15  ;;  %v182_v17 = vadd.f32 %v1922_v12, %v2004_v62 }
 0x739   :  { %1700 = vtanh.f32 %v480_v18 }
 0x746   :  { %v1701_v19 = vpop.eup %1700 }
 0x747   :  { %483 = vrot.lane.b32.xlu0 %v1701_v19, %s1807_s3 }
 0x7b9   :  { %v484_v20 = vpop.permute.xlu0 %483 }
 0x7ba   :  { %v2013_v21 = vmul.f32 %v484_v20, %v469_v11 }
 0x7bc   :  { %488 = vrot.lane.b32.xlu1 %v2013_v21, %s1808_s21 }
 0x82e   :  { %v489_v23 = vpop.permute.xlu1 %488 }
 0x82f   :  { %1599 = vmatmul.mubr.msk.f32.vlgmr.msra.gmra.mxu1 %vm197_vm5, %v489_v23 }
 0x830   :  { %1613 = vmatpush3.msra.mxu1 %v1861_v2  ;;  %1620 = vmatprep.mubr.msk.f32.mxu1 %vm1805_vm0, %v1804_v0 }
 0x831   :  { %1614 = vmatprep.subr.mxu1 %v1804_v0 }
 0x832   :  { %1615 = vmatpush3.msra.mxu1 %v1872_v4 }
 0x833   :  { %1616 = vmatprep.subr.mxu1 %v1804_v0 }
 0x834   :  { %1617 = vmatpush3.msra.mxu1 %v1885_v7 }
 0x835   :  { %1618 = vmatprep.subr.mxu1 %v1804_v0 }
 0x836   :  { %1619 = vmatpush3.msra.mxu1 %v1893_v8 }
 0x837   :  { %1634 = vmatprep.subr.mxu1 %v1804_v0 }
 0x8ef   :  { %v558_v25 = vpop.f32.mrf.mxu1 }
 0x8f0   :  { %v562_v26 = vadd.f32 %v558_v25, %v167_v24 }
 0x8f1   :  { %v1600_v27 = vpop.f32.mrf.mxu1 }
 0x8f2   :  { %v563_v28 = vmul.f32 %v562_v26, %v1925_v16 }
 0x8f4   :  { %1702 = vtanh.f32 %v563_v28 }
 0x901   :  { %v1703_v29 = vpop.eup %1702 }
 0x902   :  { %v565_v30 = vmul.f32 %v1703_v29, %v1925_v16 }
 0x904   :  { %v566_v31 = vadd.f32 %v565_v30, %v1928_v22 }
 0x906   :  { %569 = vrot.lane.b32.xlu0 %v566_v31, %s1807_s3  ;;  %v567_v35 = vmul.f32 %v566_v31, %v480_v18 }
 0x978   :  { %v570_v33 = vpop.permute.xlu0 %569 }
 0x979   :  { %v572_v34 = vmul.f32 %v570_v33, %v566_v31 }
 0x97b   :  { %574 = vrot.lane.b32.xlu1 %v572_v34, %s1808_s21 }
 0x9ed   :  { %v575_v36 = vpop.permute.xlu1 %574 }
 0x9ee   :  { %v577_v37 = vadd.f32 %v575_v36, %v567_v35  ;;  %v187_v36 = vadd.f32 %v2002_v61, %v1922_v12  ;;  %v1435_v12 = vmul.f32 -1.442695, %v2013_v21 }
 0x9f0   :  { %1704 = vtanh.f32 %v577_v37 }
 0x9fd   :  { %v1705_v38 = vpop.eup %1704 }
 0x9fe   :  { %580 = vrot.lane.b32.xlu0 %v1705_v38, %s1807_s3 }
 0xa70   :  { %v581_v39 = vpop.permute.xlu0 %580 }
 0xa71   :  { %v2035_v40 = vmul.f32 %v581_v39, %v566_v31 }
 0xa73   :  { %585 = vrot.lane.b32.xlu1 %v2035_v40, %s1808_s21 }
 0xae5   :  { %v586_v41 = vpop.permute.xlu1 %585 }
 0xae6   :  { %1610 = vmatmul.mubr.msk.f32.vlgmr.msra.gmra.mxu0 %vm197_vm5, %v586_v41 }
 0xae7   :  { %1624 = vmatpush3.msra.mxu0 %v1861_v2  ;;  %1631 = vmatprep.mubr.msk.f32.mxu0 %vm1805_vm0, %v1804_v0 }
 0xae8   :  { %1625 = vmatprep.subr.mxu0 %v1804_v0 }
 0xae9   :  { %1626 = vmatpush3.msra.mxu0 %v1872_v4 }
 0xaea   :  { %1627 = vmatprep.subr.mxu0 %v1804_v0 }
 0xaeb   :  { %1628 = vmatpush3.msra.mxu0 %v1885_v7 }
 0xaec   :  { %1629 = vmatprep.subr.mxu0 %v1804_v0 }
 0xaed   :  { %1630 = vmatpush3.msra.mxu0 %v1893_v8 }
 0xba6   :  { %v655_v43 = vpop.f32.mrf.mxu0 }
 0xba7   :  { %v659_v44 = vadd.f32 %v655_v43, %v172_v42 }
 0xba8   :  { %v1611_v45 = vpop.f32.mrf.mxu0 }
 0xba9   :  { %v660_v46 = vmul.f32 %v659_v44, %v1925_v16  ;;  %v1433_v45 = vmul.f32 -1.442695, %v1935_v32 }
 0xbab   :  { %1706 = vtanh.f32 %v660_v46 }
 0xbb8   :  { %v1707_v47 = vpop.eup %1706 }
 0xbb9   :  { %v662_v48 = vmul.f32 %v1707_v47, %v1925_v16 }
 0xbbb   :  { %v663_v49 = vadd.f32 %v662_v48, %v1928_v22 }
 0xbbd   :  { %666 = vrot.lane.b32.xlu0 %v663_v49, %s1807_s3  ;;  %v664_v52 = vmul.f32 %v663_v49, %v577_v37 }
 0xc2f   :  { %v667_v50 = vpop.permute.xlu0 %666 }
 0xc30   :  { %v669_v51 = vmul.f32 %v667_v50, %v663_v49 }
 0xc32   :  { %671 = vrot.lane.b32.xlu1 %v669_v51, %s1808_s21 }
 0xca4   :  { %v672_v53 = vpop.permute.xlu1 %671 }
 0xca5   :  { %v674_v54 = vadd.f32 %v672_v53, %v664_v52 }
 0xca7   :  { %1708 = vtanh.f32 %v674_v54 }
 0xcb4   :  { %v1709_v56 = vpop.eup %1708 }
 0xcb5   :  { %677 = vrot.lane.b32.xlu0 %v1709_v56, %s1807_s3 }
 0xd27   :  { %v678_v57 = vpop.permute.xlu0 %677 }
 0xd28   :  { %v2057_v58 = vmul.f32 %v678_v57, %v663_v49 }
 0xd2a   :  { %682 = vrot.lane.b32.xlu1 %v2057_v58, %s1808_s21  ;;  %v1437_v61 = vmul.f32 -1.442695, %v2057_v58  ;;  %v36_v58 = vld [vmem:[%s2208_s4 + $0x18] sm:$0xff] }
 0xd2b   :  { %1645 = vmatprep.subr.mxu0 %v36_v58 }
 0xd9c   :  { %v683_v60 = vpop.permute.xlu1 %682 }
 0xd9d   :  { %1621 = vmatmul.mubr.msk.f32.vlgmr.msra.gmra.mxu1 %vm197_vm5, %v683_v60  ;;  %v35_v60 = vld [vmem:[%s2208_s4 + $0x10] sm:$0xff] }
 0xd9e   :  { %1635 = vmatpush3.msra.mxu1 %v1861_v2  ;;  %1642 = vmatprep.mubr.msk.f32.mxu1 %vm1805_vm0, %v1804_v0 }
 0xd9f   :  { %1636 = vmatprep.subr.mxu1 %v1804_v0 }
 0xda0   :  { %1637 = vmatpush3.msra.mxu1 %v1872_v4 }
 0xda1   :  { %1638 = vmatprep.subr.mxu1 %v1804_v0 }
 0xda2   :  { %1639 = vmatpush3.msra.mxu1 %v1885_v7 }
 0xda3   :  { %1640 = vmatprep.subr.mxu1 %v1804_v0 }
 0xda4   :  { %1641 = vmatpush3.msra.mxu1 %v1893_v8 }
 0xe5d   :  { %v752_v1 = vpop.f32.mrf.mxu1 }
 0xe5e   :  { %v756_v2 = vadd.f32 %v752_v1, %v177_v63  ;;  %v1434_v63 = vmul.f32 -1.442695, %v1983_v55  ;;  %v1436_v1 = vmul.f32 -1.442695, %v2035_v40  ;;  %v34_v55 = vld [vmem:[%s2208_s4 + $0x8] sm:$0xff]  ;;  %v33_v40 = vld [vmem:[%s2208_s4] sm:$0xff] }
 0xe5f   :  { %v1622_v3 = vpop.f32.mrf.mxu1 }
 0xe60   :  { %v757_v5 = vmul.f32 %v756_v2, %v1925_v16 }
 0xe62   :  { %1710 = vtanh.f32 %v757_v5 }
 0xe6f   :  { %v1711_v6 = vpop.eup %1710 }
 0xe70   :  { %v759_v4 = vmul.f32 %v1711_v6, %v1925_v16 }
 0xe72   :  { %v760_v9 = vadd.f32 %v759_v4, %v1928_v22 }
 0xe74   :  { %763 = vrot.lane.b32.xlu0 %v760_v9, %s1807_s3  ;;  %v761_v8 = vmul.f32 %v760_v9, %v674_v54 }
 0xee6   :  { %v764_v7 = vpop.permute.xlu0 %763 }
 0xee7   :  { %v766_v0 = vmul.f32 %v764_v7, %v760_v9 }
 0xee9   :  { %768 = vrot.lane.b32.xlu1 %v766_v0, %s1808_s21 }
 0xf5b   :  { %v769_v10 = vpop.permute.xlu1 %768 }
 0xf5c   :  { %v771_v59 = vadd.f32 %v769_v10, %v761_v8 }
 0xf5e   :  { %1712 = vtanh.f32 %v771_v59 }
 0xf6b   :  { %v1713_v11 = vpop.eup %1712 }
 0xf6c   :  { %774 = vrot.lane.b32.xlu0 %v1713_v11, %s1807_s3 }
 0xfde   :  { %v775_v13 = vpop.permute.xlu0 %774 }
 0xfdf   :  { %v2079_v14 = vmul.f32 %v775_v13, %v760_v9 }
 0xfe1   :  { %779 = vrot.lane.b32.xlu1 %v2079_v14, %s1808_s21  ;;  %v1438_v2 = vmul.f32 -1.442695, %v2079_v14 }
0x1053   :  { %v780_v15 = vpop.permute.xlu1 %779 }
0x1054   :  { %1632 = vmatmul.mubr.msk.f32.vlgmr.msra.gmra.mxu0 %vm197_vm5, %v780_v15 }
0x1055   :  { %1646 = vmatpush3.msra.mxu0 %v36_v58 }
0x1056   :  { %1647 = vmatprep.subr.mxu0 %v35_v60 }
0x1057   :  { %1648 = vmatpush3.msra.mxu0 %v35_v60 }
0x1058   :  { %1649 = vmatprep.subr.mxu0 %v34_v55 }
0x1059   :  { %1650 = vmatpush3.msra.mxu0 %v34_v55 }
0x105a   :  { %1651 = vmatprep.subr.mxu0 %v33_v40 }
0x105b   :  { %1652 = vmatpush3.msra.mxu0 %v33_v40 }
0x1114   :  { %v849_v18 = vpop.f32.mrf.mxu0 }
0x1115   :  { %v853_v19 = vadd.f32 %v849_v18, %v182_v17 }
0x1116   :  { %v1633_v20 = vpop.f32.mrf.mxu0 }
0x1117   :  { %v854_v23 = vmul.f32 %v853_v19, %v1925_v16 }
0x1119   :  { %1714 = vtanh.f32 %v854_v23 }
0x1126   :  { %v1715_v24 = vpop.eup %1714 }
0x1127   :  { %v856_v25 = vmul.f32 %v1715_v24, %v1925_v16 }
0x1129   :  { %v857_v26 = vadd.f32 %v856_v25, %v1928_v22 }
0x112b   :  { %860 = vrot.lane.b32.xlu0 %v857_v26, %s1807_s3  ;;  %v858_v29 = vmul.f32 %v857_v26, %v771_v59 }
0x119d   :  { %v861_v27 = vpop.permute.xlu0 %860 }
0x119e   :  { %v863_v28 = vmul.f32 %v861_v27, %v857_v26 }
0x11a0   :  { %865 = vrot.lane.b32.xlu1 %v863_v28, %s1808_s21 }
0x1212   :  { %v866_v30 = vpop.permute.xlu1 %865 }
0x1213   :  { %v2091_v62 = vadd.f32 %v866_v30, %v858_v29 }
0x1215   :  { %1716 = vtanh.f32 %v2091_v62 }
0x1222   :  { %v1717_v31 = vpop.eup %1716 }
0x1223   :  { %871 = vrot.lane.b32.xlu0 %v1717_v31, %s1807_s3  ;;  %v40_v31 = vld [vmem:[%s2209_s6 + $0x10] sm:$0xff] }
0x1295   :  { %v872_v33 = vpop.permute.xlu0 %871 }
0x1296   :  { %v874_v34 = vmul.f32 %v872_v33, %v857_v26  ;;  %v39_v33 = vld [vmem:[%s2209_s6 + $0x8] sm:$0xff] }
0x1298   :  { %876 = vrot.lane.b32.xlu1 %v874_v34, %s1808_s21  ;;  %v1439_v46 = vmul.f32 -1.442695, %v874_v34  ;;  %v38_v34 = vld [vmem:[%s2209_s6] sm:$0xff] }
0x130a   :  { %v877_v35 = vpop.permute.xlu1 %876 }
0x130b   :  { %1643 = vmatmul.mubr.msk.f32.vlgmr.msra.gmra.mxu1 %vm197_vm5, %v877_v35 }
0x13cb   :  { %v946_v37 = vpop.f32.mrf.mxu1 }
0x13cc   :  { %v950_v38 = vadd.f32 %v946_v37, %v187_v36  ;;  %v1441_v36 = vld [vmem:[%s2210_s5] ss:$0 sm:$0xff] }
0x13cd   :  { %v1644_v39 = vpop.f32.mrf.mxu1 }
0x13ce   :  { %v951_v41 = vmul.f32 %v950_v38, %v1925_v16 }
0x13d0   :  { %1718 = vtanh.f32 %v951_v41 }
0x13d1   :  { %1720 = vpow2.f32 %v1433_v45 }
0x13d2   :  { %1722 = vpow2.f32 %v1435_v12 }
0x13d3   :  { %1724 = vpow2.f32 %v1437_v61 }
0x13d4   :  { %1726 = vpow2.f32 %v1439_v46 }
0x13dd   :  { %v1719_v42 = vpop.eup %1718 }
0x13de   :  { %v953_v43 = vmul.f32 %v1719_v42, %v1925_v16  ;;  %v1721_v47 = vpop.eup %1720 }
0x13df   :  { %v996_v48 = vadd.f32 1.0, %v1721_v47  ;;  %v1723_v16 = vpop.eup %1722 }
0x13e0   :  { %v2102_v44 = vadd.f32 %v953_v43, %v1928_v22  ;;  %v998_v22 = vadd.f32 1.0, %v1723_v16  ;;  %v1725_v49 = vpop.eup %1724 }
0x13e1   :  { %1728 = vrcp.f32 %v996_v48  ;;  %v1000_v50 = vadd.f32 1.0, %v1725_v49  ;;  %v1727_v51 = vpop.eup %1726 }
0x13e2   :  { %957 = vrot.lane.b32.xlu0 %v2102_v44, %s1807_s3  ;;  %1730 = vrcp.f32 %v998_v22  ;;  %v1002_v32 = vadd.f32 1.0, %v1727_v51  ;;  %v955_v3 = vmul.f32 %v2102_v44, %v2091_v62  ;;  %v41_v62 = vld [vmem:[%s2209_s6 + $0x18] sm:$0xff] }
0x13e3   :  { %1732 = vrcp.f32 %v1000_v50  ;;  %1665 = vmatprep.subr.mxu1 %v41_v62 }
0x13e4   :  { %1734 = vrcp.f32 %v1002_v32  ;;  %1666 = vmatpush3.msra.mxu1 %v41_v62 }
0x13e5   :  { %1736 = vpow2.f32 %v1434_v63  ;;  %1667 = vmatprep.subr.mxu1 %v40_v31 }
0x13e6   :  { %1738 = vpow2.f32 %v1436_v1  ;;  %1668 = vmatpush3.msra.mxu1 %v40_v31 }
0x13e7   :  { %1740 = vpow2.f32 %v1438_v2  ;;  %1669 = vmatprep.subr.mxu1 %v39_v33 }
0x13e8   :  { %1670 = vmatpush3.msra.mxu1 %v39_v33 }
0x13e9   :  { %1671 = vmatprep.subr.mxu1 %v38_v34 }
0x13ea   :  { %1672 = vmatpush3.msra.mxu1 %v38_v34 }
0x13ee   :  { %v1729_v53 = vpop.eup %1728 }
0x13ef   :  { %v1731_v54 = vpop.eup %1730 }
0x13f0   :  { %v1733_v56 = vpop.eup %1732 }
0x13f1   :  { %v1735_v57 = vpop.eup %1734 }
0x13f2   :  { %v1737_v5 = vpop.eup %1736 }
0x13f3   :  { %v997_v9 = vadd.f32 1.0, %v1737_v5  ;;  %v1739_v7 = vpop.eup %1738 }
0x13f4   :  { %v999_v8 = vadd.f32 1.0, %v1739_v7  ;;  %v1741_v10 = vpop.eup %1740 }
0x13f5   :  { %v1001_v59 = vadd.f32 1.0, %v1741_v10 }
0x1454   :  { %v958_v52 = vpop.permute.xlu0 %957 }
0x1455   :  { %v960_v21 = vmul.f32 %v958_v52, %v2102_v44 }
0x1457   :  { %962 = vrot.lane.b32.xlu1 %v960_v21, %s1808_s21 }
0x145b   :  { %1034 = vrot.lane.b32.xlu1 %v1729_v53, %s1808_s21 }
0x145f   :  { %1038 = vrot.lane.b32.xlu1 %v1731_v54, %s1808_s21 }
0x1463   :  { %1042 = vrot.lane.b32.xlu1 %v1733_v56, %s1808_s21 }
0x1467   :  { %1046 = vrot.lane.b32.xlu1 %v1735_v57, %s1808_s21 }
0x14c9   :  { %v963_v6 = vpop.permute.xlu1 %962 }
0x14ca   :  { %v965_v4 = vadd.f32 %v963_v6, %v955_v3 }
0x14cc   :  { %1742 = vtanh.f32 %v965_v4 }
0x14cd   :  { %v1035_v0 = vpop.permute.xlu1 %1034  ;;  %1744 = vrcp.f32 %v997_v9 }
0x14ce   :  { %1653 = vmatprep.mubr.msk.f32.mxu0 %vm197_vm5, %v1035_v0  ;;  %1746 = vrcp.f32 %v999_v8 }
0x14cf   :  { %1748 = vrcp.f32 %v1001_v59 }
0x14d1   :  { %v1039_v18 = vpop.permute.xlu1 %1038 }
0x14d5   :  { %v1043_v24 = vpop.permute.xlu1 %1042 }
0x14d9   :  { %v1743_v11 = vpop.eup %1742  ;;  %v1047_v27 = vpop.permute.xlu1 %1046 }
0x14da   :  { %968 = vrot.lane.b32.xlu0 %v1743_v11, %s1807_s3  ;;  %v1745_v13 = vpop.eup %1744 }
0x14db   :  { %v1747_v14 = vpop.eup %1746 }
0x14dc   :  { %v1749_v15 = vpop.eup %1748 }
0x14de   :  { %1036 = vrot.lane.b32.xlu0 %v1745_v13, %s1808_s21 }
0x14e2   :  { %1040 = vrot.lane.b32.xlu0 %v1747_v14, %s1808_s21 }
0x14e6   :  { %1044 = vrot.lane.b32.xlu0 %v1749_v15, %s1808_s21 }
0x154c   :  { %v969_v17 = vpop.permute.xlu0 %968 }
0x154d   :  { %v971_v19 = vmul.f32 %v969_v17, %v2102_v44 }
0x154f   :  { %v1440_v20 = vmul.f32 -1.442695, %v971_v19 }
0x1550   :  { %v1037_v23 = vpop.permute.xlu0 %1036 }
0x1551   :  { %1750 = vpow2.f32 %v1440_v20  ;;  %1654 = vmatmul.mubr.msk.f32.vlgmr.msra.gmra.mxu0 %vm197_vm5, %v1037_v23 }
0x1552   :  { %1656 = vmatprep.mubr.msk.f32.mxu0 %vm197_vm5, %v1039_v18 }
0x1554   :  { %v1041_v25 = vpop.permute.xlu0 %1040 }
0x1555   :  { %1657 = vmatmul.mubr.msk.f32.gmra.mxu0 %vm197_vm5, %v1041_v25 }
0x1556   :  { %1659 = vmatprep.mubr.msk.f32.mxu0 %vm197_vm5, %v1043_v24  ;;  %v1458_v24 = vld [vmem:[%s2211_s7] ss:$0 sm:$0xff] }
0x1558   :  { %v1045_v26 = vpop.permute.xlu0 %1044 }
0x1559   :  { %1660 = vmatmul.mubr.msk.f32.gmra.mxu0 %vm197_vm5, %v1045_v26 }
0x155a   :  { %1662 = vmatprep.mubr.msk.f32.mxu0 %vm197_vm5, %v1047_v27 }
0x155e   :  { %v1751_v28 = vpop.eup %1750 }
0x155f   :  { %v1003_v29 = vadd.f32 1.0, %v1751_v28 }
0x1561   :  { %1752 = vrcp.f32 %v1003_v29 }
0x156e   :  { %v1753_v30 = vpop.eup %1752 }
0x156f   :  { %1048 = vrot.lane.b32.xlu0 %v1753_v30, %s1808_s21 }
0x15e1   :  { %v1049_v35 = vpop.permute.xlu0 %1048 }
0x15e2   :  { %1663 = vmatmul.mubr.msk.f32.gmra.mxu0 %vm197_vm5, %v1049_v35 }
0x1611   :  { %v1655_v37 = vpop.f32.mrf.mxu0 }
0x1612   :  { %v1138_v38 = vadd.f32 %v1655_v37, %v1441_v36 }
0x1613   :  { %v1132_v39 = vpop.f32.mrf.mxu0 }
0x1614   :  { %v1451_v41 = vmul.f32 -1.442695, %v1138_v38  ;;  %v1133_v42 = vadd.f32 %v1441_v36, %v1132_v39 }
0x1615   :  { %v1658_v43 = vpop.f32.mrf.mxu0 }
0x1616   :  { %1754 = vpow2.f32 %v1451_v41  ;;  %v1450_v44 = vmul.f32 -1.442695, %v1133_v42  ;;  %v1148_v45 = vadd.f32 %v1658_v43, %v1441_v36 }
0x1617   :  { %v1142_v12 = vpop.f32.mrf.mxu0 }
0x1618   :  { %1756 = vpow2.f32 %v1450_v44  ;;  %v1453_v61 = vmul.f32 -1.442695, %v1148_v45  ;;  %v1143_v46 = vadd.f32 %v1441_v36, %v1142_v12 }
0x1619   :  { %v1661_v47 = vpop.f32.mrf.mxu0 }
0x161a   :  { %1758 = vpow2.f32 %v1453_v61  ;;  %v1452_v48 = vmul.f32 -1.442695, %v1143_v46  ;;  %v1158_v16 = vadd.f32 %v1661_v47, %v1441_v36 }
0x161b   :  { %v1152_v22 = vpop.f32.mrf.mxu0 }
0x161c   :  { %1760 = vpow2.f32 %v1452_v48  ;;  %v1455_v49 = vmul.f32 -1.442695, %v1158_v16  ;;  %v1153_v50 = vadd.f32 %v1441_v36, %v1152_v22 }
0x161e   :  { %1762 = vpow2.f32 %v1455_v49  ;;  %v1454_v51 = vmul.f32 -1.442695, %v1153_v50 }
0x1620   :  { %1764 = vpow2.f32 %v1454_v51 }
0x1623   :  { %v1755_v52 = vpop.eup %1754 }
0x1624   :  { %v1196_v21 = vadd.f32 1.0, %v1755_v52 }
0x1625   :  { %v1757_v32 = vpop.eup %1756 }
0x1626   :  { %v1195_v53 = vadd.f32 1.0, %v1757_v32 }
0x1627   :  { %v1759_v54 = vpop.eup %1758 }
0x1628   :  { %1766 = vrcp.f32 %v1195_v53  ;;  %v1198_v57 = vadd.f32 1.0, %v1759_v54 }
0x1629   :  { %v1761_v56 = vpop.eup %1760  ;;  %1768 = vrcp.f32 %v1196_v21 }
0x162a   :  { %v1197_v58 = vadd.f32 1.0, %v1761_v56 }
0x162b   :  { %v1763_v60 = vpop.eup %1762 }
0x162c   :  { %1770 = vrcp.f32 %v1197_v58  ;;  %v1200_v1 = vadd.f32 1.0, %v1763_v60 }
0x162d   :  { %v1765_v63 = vpop.eup %1764  ;;  %1772 = vrcp.f32 %v1198_v57 }
0x162e   :  { %v1199_v2 = vadd.f32 1.0, %v1765_v63 }
0x1630   :  { %1774 = vrcp.f32 %v1199_v2 }
0x1631   :  { %1776 = vrcp.f32 %v1200_v1 }
0x1635   :  { %v1767_v3 = vpop.eup %1766 }
0x1636   :  { %v1769_v5 = vpop.eup %1768  ;;  %1673 = vmatprep.mubr.msk.f32.mxu1 %vm197_vm5, %v1767_v3 }
0x1637   :  { %1674 = vmatmul.mubr.msk.f32.vlgmr.msra.gmra.mxu1 %vm197_vm5, %v1769_v5 }
0x1639   :  { %v1771_v6 = vpop.eup %1770 }
0x163a   :  { %v1773_v4 = vpop.eup %1772  ;;  %1676 = vmatprep.mubr.msk.f32.mxu1 %vm197_vm5, %v1771_v6 }
0x163b   :  { %1677 = vmatmul.mubr.msk.f32.gmra.mxu1 %vm197_vm5, %v1773_v4 }
0x163d   :  { %v1775_v9 = vpop.eup %1774 }
0x163e   :  { %v1777_v7 = vpop.eup %1776  ;;  %1679 = vmatprep.mubr.msk.f32.mxu1 %vm197_vm5, %v1775_v9 }
0x163f   :  { %1680 = vmatmul.mubr.msk.f32.gmra.mxu1 %vm197_vm5, %v1777_v7 }
0x16a2   :  { %v1664_v0 = vpop.f32.mrf.mxu0 }
0x16a3   :  { %v1168_v55 = vadd.f32 %v1664_v0, %v1441_v36 }
0x16a4   :  { %v1162_v40 = vpop.f32.mrf.mxu0 }
0x16a5   :  { %v1457_v8 = vmul.f32 -1.442695, %v1168_v55  ;;  %v1163_v10 = vadd.f32 %v1441_v36, %v1162_v40 }
0x16a7   :  { %1778 = vpow2.f32 %v1457_v8  ;;  %v1456_v59 = vmul.f32 -1.442695, %v1163_v10 }
0x16a9   :  { %1780 = vpow2.f32 %v1456_v59 }
0x16b4   :  { %v1779_v11 = vpop.eup %1778 }
0x16b5   :  { %v1202_v14 = vadd.f32 1.0, %v1779_v11 }
0x16b6   :  { %v1781_v13 = vpop.eup %1780 }
0x16b7   :  { %v1201_v15 = vadd.f32 1.0, %v1781_v13 }
0x16b9   :  { %1782 = vrcp.f32 %v1201_v15 }
0x16ba   :  { %1784 = vrcp.f32 %v1202_v14 }
0x16c6   :  { %v1783_v17 = vpop.eup %1782 }
0x16c7   :  { %v1785_v18 = vpop.eup %1784  ;;  %1682 = vmatprep.mubr.msk.f32.mxu1 %vm197_vm5, %v1783_v17 }
0x16c8   :  { %1683 = vmatmul.mubr.msk.f32.gmra.mxu1 %vm197_vm5, %v1785_v18 }
0x16f7   :  { %v1675_v19 = vpop.f32.mrf.mxu1 }
0x16f8   :  { %v1321_v27 = vadd.f32 %v1675_v19, %v1458_v24 }
0x16f9   :  { %v1315_v20 = vpop.f32.mrf.mxu1 }
0x16fa   :  { %v1316_v26 = vadd.f32 %v1458_v24, %v1315_v20 }
0x16fb   :  { %v1678_v23 = vpop.f32.mrf.mxu1 }
0x16fc   :  { %v1354_v30 = vmax.f32 %v1316_v26, %v1321_v27  ;;  %v1331_v33 = vadd.f32 %v1678_v23, %v1458_v24 }
0x16fd   :  { %v1325_v25 = vpop.f32.mrf.mxu1 }
0x16fe   :  { %v1326_v28 = vadd.f32 %v1458_v24, %v1325_v25 }
0x16ff   :  { %v1681_v29 = vpop.f32.mrf.mxu1 }
0x1700   :  { %v1355_v62 = vmax.f32 %v1354_v30, %v1326_v28  ;;  %v1341_v38 = vadd.f32 %v1681_v29, %v1458_v24 }
0x1701   :  { %v1335_v31 = vpop.f32.mrf.mxu1 }
0x1702   :  { %v1336_v34 = vadd.f32 %v1458_v24, %v1335_v31  ;;  %v1356_v35 = vmax.f32 %v1355_v62, %v1331_v33 }
0x1704   :  { %v1357_v36 = vmax.f32 %v1356_v35, %v1336_v34 }
0x1706   :  { %v1358_v42 = vmax.f32 %v1357_v36, %v1341_v38 }
0x1788   :  { %v1684_v37 = vpop.f32.mrf.mxu1 }
0x1789   :  { %v1351_v43 = vadd.f32 %v1684_v37, %v1458_v24 }
0x178a   :  { %v1345_v39 = vpop.f32.mrf.mxu1 }
0x178b   :  { %v1346_v41 = vadd.f32 %v1458_v24, %v1345_v39 }
0x178d   :  { %v1359_v44 = vmax.f32 %v1358_v42, %v1346_v41 }
0x178f   :  { %v1360_v45 = vmax.f32 %v1359_v44, %v1351_v43 }
0x1791   :  { %v1361_v12 = vsub.f32 %v1316_v26, %v1360_v45  ;;  %v1364_v61 = vsub.f32 %v1321_v27, %v1360_v45  ;;  %v1367_v46 = vsub.f32 %v1326_v28, %v1360_v45  ;;  %v1370_v47 = vsub.f32 %v1331_v33, %v1360_v45 }
0x1792   :  { %v1373_v49 = vsub.f32 %v1336_v34, %v1360_v45  ;;  %v1376_v51 = vsub.f32 %v1341_v38, %v1360_v45  ;;  %v1379_v32 = vsub.f32 %v1346_v41, %v1360_v45  ;;  %v1382_v53 = vsub.f32 %v1351_v43, %v1360_v45 }
0x1793   :  { %v1362_v48 = vmul.f32 1.442695, %v1361_v12  ;;  %v1365_v16 = vmul.f32 1.442695, %v1364_v61  ;;  %v1368_v22 = vmul.f32 1.442695, %v1367_v46 }
0x1794   :  { %v1371_v50 = vmul.f32 1.442695, %v1370_v47  ;;  %v1374_v52 = vmul.f32 1.442695, %v1373_v49  ;;  %v1377_v21 = vmul.f32 1.442695, %v1376_v51 }
0x1795   :  { %1786 = vpow2.f32 %v1362_v48  ;;  %v1380_v54 = vmul.f32 1.442695, %v1379_v32  ;;  %v1383_v56 = vmul.f32 1.442695, %v1382_v53 }
0x1796   :  { %1788 = vpow2.f32 %v1365_v16 }
0x1797   :  { %1790 = vpow2.f32 %v1368_v22 }
0x1798   :  { %1792 = vpow2.f32 %v1371_v50 }
0x1799   :  { %1794 = vpow2.f32 %v1374_v52 }
0x179a   :  { %1796 = vpow2.f32 %v1377_v21 }
0x179b   :  { %1798 = vpow2.f32 %v1380_v54 }
0x179c   :  { %1800 = vpow2.f32 %v1383_v56 }
0x17a2   :  { %v1787_v57 = vpop.eup %1786 }
0x17a3   :  { %v1789_v58 = vpop.eup %1788 }
0x17a4   :  { %v1385_v60 = vadd.f32 %v1789_v58, %v1787_v57  ;;  %v1791_v63 = vpop.eup %1790 }
0x17a5   :  { %v1793_v2 = vpop.eup %1792 }
0x17a6   :  { %v1386_v1 = vadd.f32 %v1791_v63, %v1385_v60  ;;  %v1795_v5 = vpop.eup %1794 }
0x17a7   :  { %v1797_v4 = vpop.eup %1796 }
0x17a8   :  { %v1387_v3 = vadd.f32 %v1793_v2, %v1386_v1  ;;  %v1799_v7 = vpop.eup %1798 }
0x17a9   :  { %v1801_v55 = vpop.eup %1800 }
0x17aa   :  { %v1388_v6 = vadd.f32 %v1795_v5, %v1387_v3 }
0x17ac   :  { %v1389_v9 = vadd.f32 %v1797_v4, %v1388_v6 }
0x17ae   :  { %v1390_v0 = vadd.f32 %v1799_v7, %v1389_v9 }
0x17b0   :  { %v1391_v40 = vadd.f32 %v1801_v55, %v1390_v0 }
0x17b2   :  { %1802 = vrcp.f32 %v1391_v40 }
0x17bf   :  { %v1803_v8 = vpop.eup %1802 }
0x17c0   :  { %v1393_v10 = vmul.f32 %v1803_v8, %v1391_v40 }
0x17c2   :  { %v1394_v59 = vsub.f32 2.0, %v1393_v10 }
0x17c4   :  { %v1395_v11 = vmul.f32 %v1803_v8, %v1394_v59 }
0x17c6   :  { %v1396_v13 = vmul.f32 %v1787_v57, %v1395_v11  ;;  %v1397_v14 = vmul.f32 %v1789_v58, %v1395_v11  ;;  %v1398_v15 = vmul.f32 %v1791_v63, %v1395_v11  ;;  %v1399_v17 = vmul.f32 %v1793_v2, %v1395_v11 }
0x17c7   :  { %v1400_v18 = vmul.f32 %v1795_v5, %v1395_v11  ;;  %v1401_v19 = vmul.f32 %v1797_v4, %v1395_v11  ;;  %v1402_v20 = vmul.f32 %v1799_v7, %v1395_v11  ;;  %v1403_v23 = vmul.f32 %v1801_v55, %v1395_v11 }
0x17c8   :  { %1405 = vst.msk [vmem:[%s2212_s8] sm:$0xff] %vm1404_vm6, %v1396_v13  ;;  %1406 = vst.msk [vmem:[%s2212_s8 + $0x8] sm:$0xff] %vm1404_vm6, %v1397_v14 }
0x17c9   :  { %1407 = vst.msk [vmem:[%s2212_s8 + $0x10] sm:$0xff] %vm1404_vm6, %v1398_v15  ;;  %1408 = vst.msk [vmem:[%s2212_s8 + $0x18] sm:$0xff] %vm1404_vm6, %v1399_v17 }
0x17ca   :  { %1409 = vst.msk [vmem:[%s2212_s8 + $0x20] sm:$0xff] %vm1404_vm6, %v1400_v18  ;;  %1410 = vst.msk [vmem:[%s2212_s8 + $0x28] sm:$0xff] %vm1404_vm6, %v1401_v19 }
0x17cb   :  { %1411 = vst.msk [vmem:[%s2212_s8 + $0x30] sm:$0xff] %vm1404_vm6, %v1402_v20  ;;  %1412 = vst.msk [vmem:[%s2212_s8 + $0x38] sm:$0xff] %vm1404_vm6, %v1403_v23 }

</bundles_post_ra>
